<compile_context>
chip_gen: v5e
topology: v5e:2x2
jax: 0.10.0
libtpu: 0.0.40
codegen_flags: <defaults>
</compile_context>

<pallas_src>
import functools

import jax
import jax.numpy as jnp
from jax.experimental import pallas as pl
from jax.experimental.pallas import tpu as pltpu


def _mlp_kernel(x_ref, w1_ref, b1_ref, w2t_ref, b2_ref, o_ref):
    """Fused forward: out = relu(x @ W1 + b1) @ w2 + b2, written as a (bb, 1) block."""
    # Layer 1: Linear(F, H) + ReLU. Native-dtype operands, f32 MXU accumulation.
    h = jnp.dot(x_ref[...], w1_ref[...], preferred_element_type=jnp.float32)
    h = jnp.maximum(h + b1_ref[...].astype(jnp.float32), 0.0)          # (bb, H) f32

    # Layer 2: Linear(H, 1) as a VPU multiply + lane (XLU) reduction. keepdims keeps
    # the (bb, 1) result in its natural layout (no sublane->lane relayout); the tiny
    # masked single-lane store costs ~1/F of the x read traffic.
    w2 = w2t_ref[...].astype(jnp.float32)                               # (1, H)
    o = jnp.sum(h * w2, axis=-1, keepdims=True)                         # (bb, 1)
    o = o + b2_ref[...].astype(jnp.float32)                             # + scalar bias (1, 1)
    o_ref[...] = o.astype(o_ref.dtype)


def _round_up(n, m):
    return -(-n // m) * m


def _vmem_cap_bytes():
    try:
        return int(pltpu.get_tpu_info().vmem_capacity_bytes)
    except Exception:
        return 64 << 20  # conservative fallback (v7x per-TC physical VMEM)


@functools.partial(jax.jit, static_argnames=("block_batch",))
def linear_predictor_forward(x, w1, b1, w2, b2, *, block_batch=1024):
    """x: (B, F); w1: (F, H); b1: (H,) or (1, H); w2: (H, 1); b2: (1,) or (1, 1)."""
    B, F = x.shape
    Fw, H = w1.shape
    assert Fw == F
    assert w2.shape == (H, 1), "LinearPredictor head is Linear(hidden, 1)"

    w2t = w2.reshape(1, H)            # lane-dense weight row for the VPU reduction
    b1r = b1.reshape(1, H)
    b2r = b2.reshape(1, 1)

    x_item = jnp.dtype(x.dtype).itemsize
    w_item = jnp.dtype(w1.dtype).itemsize

    # Generation-aware VMEM budget: ~0.75 * physical (96 MiB v5e/v6e, 48 MiB v7x).
    budget = int(0.75 * _vmem_cap_bytes())

    def working_set(bb):
        return (2 * bb * F * x_item                  # double-buffered x tiles
                + 2 * (F * H + 2 * H + 1) * w_item   # resident weights (BlockSpec still holds 2 bufs)
                + bb * H * 4                         # f32 hidden intermediate
                + 2 * bb * x_item)                   # double-buffered output tiles

    # Small-B: shrink the tile to the sublane-rounded batch instead of padding to a
    # full tile; large-B: start from the requested tile and halve until it fits VMEM.
    bb = max(8, min(int(block_batch), _round_up(B, 8)))
    bb = _round_up(bb, 8)
    while bb > 8 and working_set(bb) > int(0.6 * budget):
        bb = max(8, _round_up(bb // 2, 8))

    num_blocks = -(-B // bb)          # cdiv; last block may be ragged (no jnp.pad of x)
    vmem_limit = int(min(max(2 * working_set(bb), 32 << 20), budget))

    out = pl.pallas_call(
        _mlp_kernel,
        out_shape=jax.ShapeDtypeStruct((B, 1), x.dtype),
        grid=(num_blocks,),
        in_specs=[
            # x: one batch tile per grid step, full feature dim. Tail block reads OOB
            # garbage rows; compute is per-row so valid rows are never contaminated.
            pl.BlockSpec((bb, F), lambda i: (i, 0)),
            # weights / biases: whole arrays, resident across the grid.
            pl.BlockSpec((F, H), lambda i: (0, 0)),
            pl.BlockSpec((1, H), lambda i: (0, 0)),
            pl.BlockSpec((1, H), lambda i: (0, 0)),
            pl.BlockSpec((1, 1), lambda i: (0, 0)),
        ],
        # (bb, 1) output block: bb is 8-aligned, last dim equals the full dim; OOB
        # rows of the ragged tail block are dropped on write-back.
        out_specs=pl.BlockSpec((bb, 1), lambda i: (i, 0)),
        compiler_params=pltpu.CompilerParams(
            dimension_semantics=("parallel",),
            vmem_limit_bytes=vmem_limit,
        ),
    )(x, w1, b1r, w2t, b2r)

    return out


def _init_linear(key, fan_in, fan_out, dtype=jnp.float32):
    """Mimics torch.nn.Linear default init (U[-1/sqrt(fan_in), 1/sqrt(fan_in)]).

    Weight is returned already transposed to (fan_in, fan_out) for x @ W.
    """
    kw, kb = jax.random.split(key)
    bound = 1.0 / jnp.sqrt(jnp.float32(fan_in))
    w = jax.random.uniform(kw, (fan_in, fan_out), dtype, minval=-bound, maxval=bound)
    b = jax.random.uniform(kb, (1, fan_out), dtype, minval=-bound, maxval=bound)
    return w, b


if __name__ == "__main__":
    key = jax.random.PRNGKey(0)
    k_x, k_l1, k_l2, k_x2 = jax.random.split(key, 4)

    # Small shapes consistent with LinearPredictor(in_features, model_spec)
    in_features, hidden, out_features = 32, 32, 1
    w1, b1 = _init_linear(k_l1, in_features, hidden)
    w2, b2 = _init_linear(k_l2, hidden, out_features)

    def ref_fwd(x):
        return jnp.maximum(x @ w1 + b1, 0.0) @ w2 + b2

    # Case 1: small batch (single block, sublane-rounded tile, no 16x padding).
    x_small = jax.random.normal(k_x, (16, in_features), jnp.float32)
    out_small = jax.block_until_ready(linear_predictor_forward(x_small, w1, b1, w2, b2))
    assert out_small.shape == (16, out_features)
    assert jnp.allclose(out_small, ref_fwd(x_small), atol=1e-5, rtol=1e-5)

    # Case 2: B > block_batch with a ragged tail block (multi-block lowering + OOB masking).
    x_big = jax.random.normal(k_x2, (300, in_features), jnp.float32)
    out_big = jax.block_until_ready(
        linear_predictor_forward(x_big, w1, b1, w2, b2, block_batch=128))
    assert out_big.shape == (300, out_features)
    assert jnp.allclose(out_big, ref_fwd(x_big), atol=1e-5, rtol=1e-5)

    print("KERNEL_OK")
</pallas_src>

<mosaic_0001>
module attributes {stable_mosaic.version = 11 : i64} {
  func.func @_mlp_kernel(%arg0: i32, %arg1: memref<16x32xf32, #tpu.memory_space<vmem>>, %arg2: memref<32x32xf32, #tpu.memory_space<vmem>>, %arg3: memref<1x32xf32, #tpu.memory_space<vmem>>, %arg4: memref<1x32xf32, #tpu.memory_space<vmem>>, %arg5: memref<1x1xf32, #tpu.memory_space<vmem>>, %arg6: memref<16x1xf32, #tpu.memory_space<vmem>>) attributes {dimension_semantics = [#tpu.dimension_semantics<parallel>], iteration_bounds = array<i64: 1>, scalar_prefetch = 0 : i64, scratch_operands = 0 : i64, tpu.core_type = #tpu.core_type<tc>, window_params = [{transform_indices = @transform_0, window_bounds = array<i64: 16, 32>}, {pipeline_mode = #tpu.pipeline_mode<synchronous>, transform_indices = @transform_1, window_bounds = array<i64: 32, 32>}, {pipeline_mode = #tpu.pipeline_mode<synchronous>, transform_indices = @transform_2, window_bounds = array<i64: 1, 32>}, {pipeline_mode = #tpu.pipeline_mode<synchronous>, transform_indices = @transform_3, window_bounds = array<i64: 1, 32>}, {pipeline_mode = #tpu.pipeline_mode<synchronous>, transform_indices = @transform_4, window_bounds = array<i64: 1, 1>}, {transform_indices = @transform_5, window_bounds = array<i64: 16, 1>}]} {
    %c0 = arith.constant 0 : index
    %c0_0 = arith.constant 0 : index
    %0 = vector.load %arg1[%c0, %c0_0] : memref<16x32xf32, #tpu.memory_space<vmem>>, vector<16x32xf32>
    %c0_1 = arith.constant 0 : index
    %c0_2 = arith.constant 0 : index
    %1 = vector.load %arg2[%c0_1, %c0_2] : memref<32x32xf32, #tpu.memory_space<vmem>>, vector<32x32xf32>
    %cst = arith.constant dense<0.000000e+00> : vector<16x32xf32>
    %2 = tpu.matmul %0, %1, %cst {dimension_numbers = #tpu.dot_dimension_numbers<[1], [0], [0], [1], [0, 0, 1, 1], [], []>} : vector<16x32xf32>, vector<32x32xf32>, vector<16x32xf32> -> vector<16x32xf32>
    %c0_3 = arith.constant 0 : index
    %c0_4 = arith.constant 0 : index
    %3 = vector.load %arg3[%c0_3, %c0_4] : memref<1x32xf32, #tpu.memory_space<vmem>>, vector<1x32xf32>
    %4 = vector.broadcast %3 : vector<1x32xf32> to vector<16x32xf32>
    %5 = arith.addf %2, %4 : vector<16x32xf32>
    %cst_5 = arith.constant 0.000000e+00 : f32
    %6 = vector.broadcast %cst_5 : f32 to vector<16x32xf32>
    %7 = arith.maximumf %5, %6 : vector<16x32xf32>
    %c0_6 = arith.constant 0 : index
    %c0_7 = arith.constant 0 : index
    %8 = vector.load %arg4[%c0_6, %c0_7] : memref<1x32xf32, #tpu.memory_space<vmem>>, vector<1x32xf32>
    %9 = vector.broadcast %8 : vector<1x32xf32> to vector<16x32xf32>
    %10 = arith.mulf %7, %9 : vector<16x32xf32>
    %cst_8 = arith.constant dense<0.000000e+00> : vector<16xf32>
    %11 = vector.multi_reduction <add>, %10, %cst_8 [1] : vector<16x32xf32> to vector<16xf32>
    %12 = vector.shape_cast %11 : vector<16xf32> to vector<16x1xf32>
    %c0_9 = arith.constant 0 : index
    %c0_10 = arith.constant 0 : index
    %13 = vector.load %arg5[%c0_9, %c0_10] : memref<1x1xf32, #tpu.memory_space<vmem>>, vector<1x1xf32>
    %14 = vector.broadcast %13 : vector<1x1xf32> to vector<16x1xf32>
    %15 = arith.addf %12, %14 : vector<16x1xf32>
    %c0_11 = arith.constant 0 : index
    %c0_12 = arith.constant 0 : index
    %16 = vector.load %arg6[%c0_11, %c0_12] : memref<16x1xf32, #tpu.memory_space<vmem>>, vector<16x1xf32>
    tpu.vector_store %arg6[%c0_11, %c0_12], %15 {strides = array<i32>} : memref<16x1xf32, #tpu.memory_space<vmem>>, vector<16x1xf32>,
    return
  }
  func.func @transform_0(%arg0: i32) -> (i32, i32) {
    %c0_i32 = arith.constant 0 : i32
    %c0_i32_0 = arith.constant 0 : i32
    return %arg0, %c0_i32 : i32, i32
  }
  func.func @transform_1(%arg0: i32) -> (i32, i32) {
    %c0_i32 = arith.constant 0 : i32
    %c0_i32_0 = arith.constant 0 : i32
    %c0_i32_1 = arith.constant 0 : i32
    return %c0_i32, %c0_i32_0 : i32, i32
  }
  func.func @transform_2(%arg0: i32) -> (i32, i32) {
    %c0_i32 = arith.constant 0 : i32
    %c0_i32_0 = arith.constant 0 : i32
    %c0_i32_1 = arith.constant 0 : i32
    return %c0_i32, %c0_i32_0 : i32, i32
  }
  func.func @transform_3(%arg0: i32) -> (i32, i32) {
    %c0_i32 = arith.constant 0 : i32
    %c0_i32_0 = arith.constant 0 : i32
    %c0_i32_1 = arith.constant 0 : i32
    return %c0_i32, %c0_i32_0 : i32, i32
  }
  func.func @transform_4(%arg0: i32) -> (i32, i32) {
    %c0_i32 = arith.constant 0 : i32
    %c0_i32_0 = arith.constant 0 : i32
    %c0_i32_1 = arith.constant 0 : i32
    return %c0_i32, %c0_i32_0 : i32, i32
  }
  func.func @transform_5(%arg0: i32) -> (i32, i32) {
    %c0_i32 = arith.constant 0 : i32
    %c0_i32_0 = arith.constant 0 : i32
    return %arg0, %c0_i32 : i32, i32
  }
}

</mosaic_0001>

<bundles_post_ra>
// kernel: linear_predictor_forward.1
= control target key start
LH: loop header
LB: loop body
LE: loop exit
PB: predicated region body
PF: predicated region fallthrough
CT: control target
= control target key end

     0   :  { %s247_s0 = inlined_call_operand.hbm [shape: f32[16,32], index: 0, kind: input, shape index: {}]   ;;  %s248_s1 = inlined_call_operand.hbm [shape: f32[32,32], index: 1, kind: input, shape index: {}]   ;;  %s249_s2 = inlined_call_operand.vmem [shape: f32[1,32], index: 2, kind: input, shape index: {}]   ;;  %s250_s3 = inlined_call_operand.vmem [shape: f32[1,32], index: 3, kind: input, shape index: {}]   ;;  %s251_s4 = inlined_call_operand.<no memory space> [shape: f32[1,1], index: 4, kind: input, shape index: {}]   ;;  %s252_s5 = inlined_call_operand.vmem [shape: f32[16,1], index: 5, kind: output, shape index: {}]  }
   0x1   :  { %v10_v0 = vstv %s251_s4 }
   0x2   :  { %11 = vst [vmem:[#allocation2] sm:$0x1] %v10_v0 }
   0x3   :  { %12 = vsyncpa [#allocation4], 0  ;;  %s18_s22 = sshll.u32 %s247_s0, 4  ;;  %s19_s22 = int_to_ptr.hbm [resolvable:$true] %s18_s22 }
   0x4   :  { %13 = vsyncpa [#allocation6], 0  ;;  %s188_s23 = smov [#allocation3]   ;;  %s31_s27 = sshll.u32 %s248_s1, 4  ;;  %s32_s27 = int_to_ptr.hbm [resolvable:$true] %s31_s27 }
   0x5   :  { %s20_s24 = sshll.u32 %s188_s23, 4  ;;  %s189_s28 = smov 128   ;;  %s21_s24 = int_to_ptr.vmem [resolvable:$true] %s20_s24 }
   0x6   :  { %s190_s29 = smov 8   ;;  %s191_s4 = smov [#allocation5]  }
   0x7   :  { %26 = dma.hbm_to_vmem [thread:$0]  %s19_s22, 256, %s21_s24, [#allocation4], %s189_s28, %s189_s28, %s190_s29  }
   0x8   :  { %s33_s30 = sshll.u32 %s191_s4, 4  ;;  %s34_s30 = int_to_ptr.vmem [resolvable:$true] %s33_s30 }
   0x9   :  { %39 = dma.hbm_to_vmem [thread:$0]  %s32_s27, 512, %s34_s30, [#allocation6], %s189_s28, %s189_s28, %s190_s29  }
   0xa   :  { %184 = dma.done.wait [#allocation4], 256  }
   0xb   :  { %185 = vsyncadd [#allocation4], 4294967040 }
   0xc   :  { %186 = dma.done.wait [#allocation6], 512  }
   0xd   :  { %187 = vsyncadd [#allocation6], 4294966784  ;;  %v59_v1 = vld [vmem:[#allocation5 + $0x18] sm:$0xff]  ;;  %v58_v2 = vld [vmem:[#allocation5 + $0x10] sm:$0xff]  ;;  %vm64_vm0 = vcmask 261120   ;;  %vm114_vm1 = vcmask 7168  }
   0xe   :  { %83 = vmatpush.msra.mxu0 %v59_v1  ;;  %125 = vmatpush.msra.mxu1 %v59_v1  ;;  %v57_v3 = vld [vmem:[#allocation5 + $0x8] sm:$0xff]  ;;  %v56_v4 = vld [vmem:[#allocation5] sm:$0xff]  ;;  %v54_v5 = vld [vmem:[#allocation3] sm:$0xff] }
   0xf   :  { %v55_v6 = vld [vmem:[#allocation3 + $0x8] sm:$0xff]  ;;  %v133_v7 = vld [vmem:[%s249_s2] ss:$0 sm:$0xff] }
  0x10   :  { %84 = vmatpush.msra.mxu0 %v58_v2  ;;  %126 = vmatpush.msra.mxu1 %v58_v2  ;;  %v134_v12 = vld [vmem:[%s250_s3] ss:$0 sm:$0xff] }
  0x11   :  { %v135_v19 = vld [vmem:[#allocation2] ss:$0 sm:$0xff] }
  0x12   :  { %85 = vmatpush.msra.mxu0 %v57_v3  ;;  %127 = vmatpush.msra.mxu1 %v57_v3 }
  0x14   :  { %86 = vmatpush.msra.mxu0 %v56_v4  ;;  %128 = vmatpush.msra.mxu1 %v56_v4 }
  0x15   :  { %123 = vmatmul.msk.f32.vlgmr.msra.gmra.mxu0 %vm64_vm0, %v54_v5  ;;  %124 = vmatmul.msk.f32.vlgmr.msra.gmra.mxu1 %vm64_vm0, %v55_v6 }
  0x92   :  { %v88_v8 = vpop.f32.mrf.mxu0  ;;  %v91_v9 = vpop.f32.mrf.mxu1 }
  0x93   :  { %v89_v10 = vadd.f32 %v133_v7, %v88_v8  ;;  %v92_v11 = vadd.f32 %v133_v7, %v91_v9 }
  0x95   :  { %v94_v13 = vmax.f32 %v89_v10, 0.0  ;;  %v95_v14 = vmax.f32 %v92_v11, 0.0 }
  0x97   :  { %v100_v15 = vmul.f32 %v134_v12, %v94_v13  ;;  %v101_v17 = vmul.f32 %v134_v12, %v95_v14 }
  0x99   :  { %v102_v16 = vsel %vm64_vm0, %v100_v15, 0.0  ;;  %v105_v18 = vsel %vm64_vm0, %v101_v17, 0.0 }
  0x9a   :  { %103 = vadd.xlane.f32.xlu0 %v102_v16 }
  0xa2   :  { %106 = vadd.xlane.f32.xlu0 %v105_v18 }
 0x10d   :  { %v104_v20 = vpop.xlane.xlu0 %103 }
 0x10e   :  { %v112_v21 = vadd.f32 %v135_v19, %v104_v20 }
 0x110   :  { %115 = vst.msk [vmem:[%s252_s5] sm:$0xff] %vm114_vm1, %v112_v21 }
 0x115   :  { %v107_v22 = vpop.xlane.xlu0 %106 }
 0x116   :  { %v113_v23 = vadd.f32 %v135_v19, %v107_v22 }
 0x118   :  { %116 = vst.msk [vmem:[%s252_s5 + $0x8] sm:$0xff] %vm114_vm1, %v113_v23 }
 0x119   :  { %121 = vsyncpa [#allocation4], 1 }
 0x11a   :  { %122 = vsyncpa [#allocation6], 1 }

</bundles_post_ra>
